<compile_context>
chip_gen: v5e
topology: v5e:2x2
jax: 0.10.0
libtpu: 0.0.40
codegen_flags: <defaults>
</compile_context>

<pallas_src>
import jax
import jax.numpy as jnp
from jax.experimental import pallas as pl
from jax.experimental.pallas import tpu as pltpu

EPS = 1e-5


def _make_kernel(N, H, W, C):
    NH = N * H
    WC = W * C
    inv_m = 1.0 / float(N * H * W)   # BN sample count per channel

    def kernel(x_ref, w1_ref, w2_ref, g1_ref, be1_ref, g2_ref, be2_ref,
               p_ref, o_ref):
        x = x_ref[...]                                    # (NH, WC) lane-dense
        p = p_ref[...]                                    # (WC, WC) channel selector

        # per-row image-height index (which h within its image each row is)
        h_ids = jax.lax.broadcasted_iota(jnp.int32, (NH, WC), 0) % H
        mask_up = h_ids > 0          # a row above exists within the same image
        mask_dn = h_ids < (H - 1)    # a row below exists within the same image

        def conv(xp, w_ref):
            # centre tap (ky = 1): no row shift
            acc = jnp.dot(xp, w_ref[1], preferred_element_type=jnp.float32)
            # ky = 0 tap: needs the row above -> sublane roll +1, zero h == 0
            up = jnp.where(mask_up, pltpu.roll(xp, shift=1, axis=0), 0.0)
            acc = acc + jnp.dot(up, w_ref[0], preferred_element_type=jnp.float32)
            # ky = 2 tap: needs the row below -> roll NH-1 (== -1), zero h == H-1
            dn = jnp.where(mask_dn, pltpu.roll(xp, shift=NH - 1, axis=0), 0.0)
            acc = acc + jnp.dot(dn, w_ref[2], preferred_element_type=jnp.float32)
            return acc

        def bn(y, g_ref, be_ref):
            # single-pass batch stats over N,H,W (biased variance)
            s = jnp.sum(y, axis=0, keepdims=True)          # (1, WC) per-(w,c) sums
            ss = jnp.sum(y * y, axis=0, keepdims=True)
            # fold the W positions of each channel together and broadcast back,
            # all in one tiny matmul against the 0/1 selector matrix
            mean = jnp.dot(s, p, preferred_element_type=jnp.float32) * inv_m
            ex2 = jnp.dot(ss, p, preferred_element_type=jnp.float32) * inv_m
            var = ex2 - mean * mean
            scale = g_ref[...] * jax.lax.rsqrt(var + EPS)
            return (y - mean) * scale + be_ref[...]

        h1 = jnp.maximum(bn(conv(x, w1_ref), g1_ref, be1_ref), 0.0)
        h2 = bn(conv(h1, w2_ref), g2_ref, be2_ref)
        o_ref[...] = jnp.maximum(h2 + x, 0.0).astype(o_ref.dtype)

    return kernel


def _pack_conv_weight(w_oihw, W, C):
    """PyTorch (out,in,kH,kW) -> 3 block-banded (W*C, W*C) matrices (one per ky).

    A[ky][w_in*C + c_in, w_out*C + c_out] = w[ky, (w_in - w_out)+1, c_in, c_out]
    when |w_in - w_out| <= 1, else 0.  The band structure implements the kx
    shift and the zero padding along W.
    """
    w = jnp.transpose(w_oihw, (2, 3, 1, 0)).astype(jnp.float32)   # (kH,kW,in,out)
    bands = []
    for ky in range(3):
        a = jnp.zeros((W * C, W * C), jnp.float32)
        for dx in (-1, 0, 1):
            band = jnp.eye(W, k=-dx, dtype=jnp.float32)           # w_in = w_out + dx
            a = a + jnp.kron(band, w[ky, dx + 1])
        bands.append(a)
    return jnp.stack(bands, axis=0)                               # (3, W*C, W*C)


def residual_block(x_nchw, params):
    """x_nchw: (N, C, H, W) float32; params: PyTorch-convention weights."""
    x_nchw = x_nchw.astype(jnp.float32)
    N, C, H, W = x_nchw.shape
    NH, WC = N * H, W * C

    # NCHW -> NHWC -> lane-dense (N*H, W*C) packing (pure view reshape)
    x_pack = jnp.transpose(x_nchw, (0, 2, 3, 1)).reshape(NH, WC)

    w1 = _pack_conv_weight(params["conv1_w"], W, C)
    w2 = _pack_conv_weight(params["conv2_w"], W, C)
    # NOTE: conv1_b / conv2_b are intentionally NOT passed: the per-channel
    # bias is exactly cancelled by the training-mode BatchNorm mean subtraction.

    # gamma/beta pre-tiled into packed layout: [0, w*C + c] = param[c]
    g1 = jnp.tile(params["bn1_g"].reshape(1, C).astype(jnp.float32), (1, W))
    be1 = jnp.tile(params["bn1_b"].reshape(1, C).astype(jnp.float32), (1, W))
    g2 = jnp.tile(params["bn2_g"].reshape(1, C).astype(jnp.float32), (1, W))
    be2 = jnp.tile(params["bn2_b"].reshape(1, C).astype(jnp.float32), (1, W))

    # channel selector: P[w_i*C+c_i, w_j*C+c_j] = (c_i == c_j)
    p_sel = jnp.kron(jnp.ones((W, W), jnp.float32), jnp.eye(C, dtype=jnp.float32))

    vmem = pl.BlockSpec(memory_space=pltpu.MemorySpace.VMEM)
    out_pack = pl.pallas_call(
        _make_kernel(N, H, W, C),
        out_shape=jax.ShapeDtypeStruct((NH, WC), jnp.float32),
        in_specs=[vmem] * 8,
        out_specs=vmem,
        compiler_params=pltpu.CompilerParams(
            vmem_limit_bytes=32 * 1024 * 1024),   # explicit, safe on v5e/v6e/v7x
    )(x_pack, w1, w2, g1, be1, g2, be2, p_sel)

    # (N*H, W*C) -> NHWC -> NCHW
    return jnp.transpose(out_pack.reshape(N, H, W, C), (0, 3, 1, 2))


def _reference(x, params):
    """Pure-JAX reference of the same forward pass (NCHW, includes conv bias)."""
    def conv(x, w, b):
        y = jax.lax.conv_general_dilated(
            x, w, window_strides=(1, 1), padding=((1, 1), (1, 1)),
            dimension_numbers=("NCHW", "OIHW", "NCHW"))
        return y + b.reshape(1, -1, 1, 1)

    def bn(x, g, b):
        mean = jnp.mean(x, axis=(0, 2, 3), keepdims=True)
        var = jnp.mean((x - mean) ** 2, axis=(0, 2, 3), keepdims=True)
        return (x - mean) * jax.lax.rsqrt(var + EPS) * g.reshape(1, -1, 1, 1) \
            + b.reshape(1, -1, 1, 1)

    out = conv(x, params["conv1_w"], params["conv1_b"])
    out = jnp.maximum(bn(out, params["bn1_g"], params["bn1_b"]), 0.0)
    out = conv(out, params["conv2_w"], params["conv2_b"])
    out = bn(out, params["bn2_g"], params["bn2_b"])
    return jnp.maximum(out + x, 0.0)


if __name__ == "__main__":
    N, C, H, W = 2, 8, 16, 16   # planes = 8  ->  W*C = 128 (fully lane-dense)
    key = jax.random.PRNGKey(0)
    k = jax.random.split(key, 9)

    x = jax.random.normal(k[0], (N, C, H, W), jnp.float32)
    params = {
        "conv1_w": 0.1 * jax.random.normal(k[1], (C, C, 3, 3), jnp.float32),
        "conv1_b": 0.1 * jax.random.normal(k[2], (C,), jnp.float32),
        "bn1_g": 1.0 + 0.1 * jax.random.normal(k[3], (C,), jnp.float32),
        "bn1_b": 0.1 * jax.random.normal(k[4], (C,), jnp.float32),
        "conv2_w": 0.1 * jax.random.normal(k[5], (C, C, 3, 3), jnp.float32),
        "conv2_b": 0.1 * jax.random.normal(k[6], (C,), jnp.float32),
        "bn2_g": 1.0 + 0.1 * jax.random.normal(k[7], (C,), jnp.float32),
        "bn2_b": 0.1 * jax.random.normal(k[8], (C,), jnp.float32),
    }

    out = jax.block_until_ready(residual_block(x, params))
    ref = jax.block_until_ready(_reference(x, params))
    assert out.shape == (N, C, H, W)
    err = float(jnp.max(jnp.abs(out - ref)))
    assert jnp.allclose(out, ref, rtol=1e-4, atol=2e-4), err
    print("KERNEL_OK")
</pallas_src>

<mosaic_0001>
module attributes {stable_mosaic.version = 11 : i64} {
  func.func @kernel(%arg0: memref<32x128xf32, #tpu.memory_space<vmem>>, %arg1: memref<3x128x128xf32, #tpu.memory_space<vmem>>, %arg2: memref<3x128x128xf32, #tpu.memory_space<vmem>>, %arg3: memref<1x128xf32, #tpu.memory_space<vmem>>, %arg4: memref<1x128xf32, #tpu.memory_space<vmem>>, %arg5: memref<1x128xf32, #tpu.memory_space<vmem>>, %arg6: memref<1x128xf32, #tpu.memory_space<vmem>>, %arg7: memref<128x128xf32, #tpu.memory_space<vmem>>, %arg8: memref<32x128xf32, #tpu.memory_space<vmem>>) attributes {dimension_semantics = [], scalar_prefetch = 0 : i64, scratch_operands = 0 : i64, tpu.core_type = #tpu.core_type<tc>} {
    %c0 = arith.constant 0 : index
    %c0_0 = arith.constant 0 : index
    %0 = vector.load %arg0[%c0, %c0_0] : memref<32x128xf32, #tpu.memory_space<vmem>>, vector<32x128xf32>
    %c0_1 = arith.constant 0 : index
    %c0_2 = arith.constant 0 : index
    %1 = vector.load %arg7[%c0_1, %c0_2] : memref<128x128xf32, #tpu.memory_space<vmem>>, vector<128x128xf32>
    %2 = tpu.iota {dimensions = array<i32: 0>} : vector<32x128xi32>
    %c16_i32 = arith.constant 16 : i32
    %c0_i32 = arith.constant 0 : i32
    %3 = arith.cmpi eq, %c16_i32, %c0_i32 : i32
    %c1_i32 = arith.constant 1 : i32
    %4 = arith.select %3, %c1_i32, %c16_i32 : i32
    %5 = vector.broadcast %4 : i32 to vector<32x128xi32>
    %6 = arith.remsi %2, %5 : vector<32x128xi32>
    %c0_i32_3 = arith.constant 0 : i32
    %7 = vector.broadcast %c0_i32_3 : i32 to vector<32x128xi32>
    %8 = arith.cmpi ne, %6, %7 : vector<32x128xi32>
    %c0_i32_4 = arith.constant 0 : i32
    %9 = vector.broadcast %c0_i32_4 : i32 to vector<32x128xi32>
    %10 = arith.cmpi slt, %6, %9 : vector<32x128xi32>
    %c0_i32_5 = arith.constant 0 : i32
    %11 = arith.cmpi slt, %4, %c0_i32_5 : i32
    %12 = vector.broadcast %11 : i1 to vector<32x128xi1>
    %13 = vector.broadcast %12 : vector<32x128xi1> to vector<32x128xi1>
    %14 = arith.xori %10, %13 : vector<32x128xi1>
    %15 = arith.andi %14, %8 : vector<32x128xi1>
    %16 = vector.broadcast %4 : i32 to vector<32x128xi32>
    %17 = arith.addi %6, %16 : vector<32x128xi32>
    %18 = arith.select %15, %17, %6 : vector<32x128xi1>, vector<32x128xi32>
    %c0_i32_6 = arith.constant 0 : i32
    %19 = vector.broadcast %c0_i32_6 : i32 to vector<32x128xi32>
    %20 = arith.cmpi sgt, %18, %19 : vector<32x128xi32>
    %c15_i32 = arith.constant 15 : i32
    %21 = vector.broadcast %c15_i32 : i32 to vector<32x128xi32>
    %22 = arith.cmpi slt, %18, %21 : vector<32x128xi32>
    %c1 = arith.constant 1 : index
    %c0_7 = arith.constant 0 : index
    %c0_8 = arith.constant 0 : index
    %23 = vector.load %arg1[%c1, %c0_7, %c0_8] : memref<3x128x128xf32, #tpu.memory_space<vmem>>, vector<1x128x128xf32>
    %24 = vector.shape_cast %23 : vector<1x128x128xf32> to vector<128x128xf32>
    %cst = arith.constant dense<0.000000e+00> : vector<32x128xf32>
    %25 = tpu.matmul %0, %24, %cst {dimension_numbers = #tpu.dot_dimension_numbers<[1], [0], [0], [1], [0, 0, 1, 1], [], []>} : vector<32x128xf32>, vector<128x128xf32>, vector<32x128xf32> -> vector<32x128xf32>
    %c1_i32_9 = arith.constant 1 : i32
    %26 = tpu.dynamic_rotate %0 by %c1_i32_9 dim 0 : vector<32x128xf32>, i32 -> vector<32x128xf32>
    %cst_10 = arith.constant 0.000000e+00 : f32
    %27 = vector.broadcast %cst_10 : f32 to vector<32x128xf32>
    %28 = arith.select %20, %26, %27 : vector<32x128xi1>, vector<32x128xf32>
    %c0_11 = arith.constant 0 : index
    %c0_12 = arith.constant 0 : index
    %c0_13 = arith.constant 0 : index
    %29 = vector.load %arg1[%c0_11, %c0_12, %c0_13] : memref<3x128x128xf32, #tpu.memory_space<vmem>>, vector<1x128x128xf32>
    %30 = vector.shape_cast %29 : vector<1x128x128xf32> to vector<128x128xf32>
    %cst_14 = arith.constant dense<0.000000e+00> : vector<32x128xf32>
    %31 = tpu.matmul %28, %30, %cst_14 {dimension_numbers = #tpu.dot_dimension_numbers<[1], [0], [0], [1], [0, 0, 1, 1], [], []>} : vector<32x128xf32>, vector<128x128xf32>, vector<32x128xf32> -> vector<32x128xf32>
    %32 = arith.addf %25, %31 : vector<32x128xf32>
    %c31_i32 = arith.constant 31 : i32
    %33 = tpu.dynamic_rotate %0 by %c31_i32 dim 0 : vector<32x128xf32>, i32 -> vector<32x128xf32>
    %cst_15 = arith.constant 0.000000e+00 : f32
    %34 = vector.broadcast %cst_15 : f32 to vector<32x128xf32>
    %35 = arith.select %22, %33, %34 : vector<32x128xi1>, vector<32x128xf32>
    %c2 = arith.constant 2 : index
    %c0_16 = arith.constant 0 : index
    %c0_17 = arith.constant 0 : index
    %36 = vector.load %arg1[%c2, %c0_16, %c0_17] : memref<3x128x128xf32, #tpu.memory_space<vmem>>, vector<1x128x128xf32>
    %37 = vector.shape_cast %36 : vector<1x128x128xf32> to vector<128x128xf32>
    %cst_18 = arith.constant dense<0.000000e+00> : vector<32x128xf32>
    %38 = tpu.matmul %35, %37, %cst_18 {dimension_numbers = #tpu.dot_dimension_numbers<[1], [0], [0], [1], [0, 0, 1, 1], [], []>} : vector<32x128xf32>, vector<128x128xf32>, vector<32x128xf32> -> vector<32x128xf32>
    %39 = arith.addf %32, %38 : vector<32x128xf32>
    %cst_19 = arith.constant dense<0.000000e+00> : vector<128xf32>
    %40 = vector.multi_reduction <add>, %39, %cst_19 [0] : vector<32x128xf32> to vector<128xf32>
    %41 = vector.shape_cast %40 : vector<128xf32> to vector<1x128xf32>
    %42 = arith.mulf %39, %39 : vector<32x128xf32>
    %cst_20 = arith.constant dense<0.000000e+00> : vector<128xf32>
    %43 = vector.multi_reduction <add>, %42, %cst_20 [0] : vector<32x128xf32> to vector<128xf32>
    %44 = vector.shape_cast %43 : vector<128xf32> to vector<1x128xf32>
    %cst_21 = arith.constant dense<0.000000e+00> : vector<1x128xf32>
    %45 = tpu.matmul %41, %1, %cst_21 {dimension_numbers = #tpu.dot_dimension_numbers<[1], [0], [0], [1], [0, 0, 1, 1], [], []>} : vector<1x128xf32>, vector<128x128xf32>, vector<1x128xf32> -> vector<1x128xf32>
    %cst_22 = arith.constant 0.001953125 : f32
    %46 = vector.broadcast %cst_22 : f32 to vector<1x128xf32>
    %47 = arith.mulf %45, %46 : vector<1x128xf32>
    %cst_23 = arith.constant dense<0.000000e+00> : vector<1x128xf32>
    %48 = tpu.matmul %44, %1, %cst_23 {dimension_numbers = #tpu.dot_dimension_numbers<[1], [0], [0], [1], [0, 0, 1, 1], [], []>} : vector<1x128xf32>, vector<128x128xf32>, vector<1x128xf32> -> vector<1x128xf32>
    %cst_24 = arith.constant 0.001953125 : f32
    %49 = vector.broadcast %cst_24 : f32 to vector<1x128xf32>
    %50 = arith.mulf %48, %49 : vector<1x128xf32>
    %51 = arith.mulf %47, %47 : vector<1x128xf32>
    %52 = arith.subf %50, %51 : vector<1x128xf32>
    %c0_25 = arith.constant 0 : index
    %c0_26 = arith.constant 0 : index
    %53 = vector.load %arg3[%c0_25, %c0_26] : memref<1x128xf32, #tpu.memory_space<vmem>>, vector<1x128xf32>
    %cst_27 = arith.constant 9.99999974E-6 : f32
    %54 = vector.broadcast %cst_27 : f32 to vector<1x128xf32>
    %55 = arith.addf %52, %54 : vector<1x128xf32>
    %56 = math.rsqrt %55 : vector<1x128xf32>
    %57 = arith.mulf %53, %56 : vector<1x128xf32>
    %58 = vector.broadcast %47 : vector<1x128xf32> to vector<32x128xf32>
    %59 = arith.subf %39, %58 : vector<32x128xf32>
    %60 = vector.broadcast %57 : vector<1x128xf32> to vector<32x128xf32>
    %61 = arith.mulf %59, %60 : vector<32x128xf32>
    %c0_28 = arith.constant 0 : index
    %c0_29 = arith.constant 0 : index
    %62 = vector.load %arg4[%c0_28, %c0_29] : memref<1x128xf32, #tpu.memory_space<vmem>>, vector<1x128xf32>
    %63 = vector.broadcast %62 : vector<1x128xf32> to vector<32x128xf32>
    %64 = arith.addf %61, %63 : vector<32x128xf32>
    %cst_30 = arith.constant 0.000000e+00 : f32
    %65 = vector.broadcast %cst_30 : f32 to vector<32x128xf32>
    %66 = arith.maximumf %64, %65 : vector<32x128xf32>
    %c1_31 = arith.constant 1 : index
    %c0_32 = arith.constant 0 : index
    %c0_33 = arith.constant 0 : index
    %67 = vector.load %arg2[%c1_31, %c0_32, %c0_33] : memref<3x128x128xf32, #tpu.memory_space<vmem>>, vector<1x128x128xf32>
    %68 = vector.shape_cast %67 : vector<1x128x128xf32> to vector<128x128xf32>
    %cst_34 = arith.constant dense<0.000000e+00> : vector<32x128xf32>
    %69 = tpu.matmul %66, %68, %cst_34 {dimension_numbers = #tpu.dot_dimension_numbers<[1], [0], [0], [1], [0, 0, 1, 1], [], []>} : vector<32x128xf32>, vector<128x128xf32>, vector<32x128xf32> -> vector<32x128xf32>
    %c1_i32_35 = arith.constant 1 : i32
    %70 = tpu.dynamic_rotate %66 by %c1_i32_35 dim 0 : vector<32x128xf32>, i32 -> vector<32x128xf32>
    %cst_36 = arith.constant 0.000000e+00 : f32
    %71 = vector.broadcast %cst_36 : f32 to vector<32x128xf32>
    %72 = arith.select %20, %70, %71 : vector<32x128xi1>, vector<32x128xf32>
    %c0_37 = arith.constant 0 : index
    %c0_38 = arith.constant 0 : index
    %c0_39 = arith.constant 0 : index
    %73 = vector.load %arg2[%c0_37, %c0_38, %c0_39] : memref<3x128x128xf32, #tpu.memory_space<vmem>>, vector<1x128x128xf32>
    %74 = vector.shape_cast %73 : vector<1x128x128xf32> to vector<128x128xf32>
    %cst_40 = arith.constant dense<0.000000e+00> : vector<32x128xf32>
    %75 = tpu.matmul %72, %74, %cst_40 {dimension_numbers = #tpu.dot_dimension_numbers<[1], [0], [0], [1], [0, 0, 1, 1], [], []>} : vector<32x128xf32>, vector<128x128xf32>, vector<32x128xf32> -> vector<32x128xf32>
    %76 = arith.addf %69, %75 : vector<32x128xf32>
    %c31_i32_41 = arith.constant 31 : i32
    %77 = tpu.dynamic_rotate %66 by %c31_i32_41 dim 0 : vector<32x128xf32>, i32 -> vector<32x128xf32>
    %cst_42 = arith.constant 0.000000e+00 : f32
    %78 = vector.broadcast %cst_42 : f32 to vector<32x128xf32>
    %79 = arith.select %22, %77, %78 : vector<32x128xi1>, vector<32x128xf32>
    %c2_43 = arith.constant 2 : index
    %c0_44 = arith.constant 0 : index
    %c0_45 = arith.constant 0 : index
    %80 = vector.load %arg2[%c2_43, %c0_44, %c0_45] : memref<3x128x128xf32, #tpu.memory_space<vmem>>, vector<1x128x128xf32>
    %81 = vector.shape_cast %80 : vector<1x128x128xf32> to vector<128x128xf32>
    %cst_46 = arith.constant dense<0.000000e+00> : vector<32x128xf32>
    %82 = tpu.matmul %79, %81, %cst_46 {dimension_numbers = #tpu.dot_dimension_numbers<[1], [0], [0], [1], [0, 0, 1, 1], [], []>} : vector<32x128xf32>, vector<128x128xf32>, vector<32x128xf32> -> vector<32x128xf32>
    %83 = arith.addf %76, %82 : vector<32x128xf32>
    %cst_47 = arith.constant dense<0.000000e+00> : vector<128xf32>
    %84 = vector.multi_reduction <add>, %83, %cst_47 [0] : vector<32x128xf32> to vector<128xf32>
    %85 = vector.shape_cast %84 : vector<128xf32> to vector<1x128xf32>
    %86 = arith.mulf %83, %83 : vector<32x128xf32>
    %cst_48 = arith.constant dense<0.000000e+00> : vector<128xf32>
    %87 = vector.multi_reduction <add>, %86, %cst_48 [0] : vector<32x128xf32> to vector<128xf32>
    %88 = vector.shape_cast %87 : vector<128xf32> to vector<1x128xf32>
    %cst_49 = arith.constant dense<0.000000e+00> : vector<1x128xf32>
    %89 = tpu.matmul %85, %1, %cst_49 {dimension_numbers = #tpu.dot_dimension_numbers<[1], [0], [0], [1], [0, 0, 1, 1], [], []>} : vector<1x128xf32>, vector<128x128xf32>, vector<1x128xf32> -> vector<1x128xf32>
    %cst_50 = arith.constant 0.001953125 : f32
    %90 = vector.broadcast %cst_50 : f32 to vector<1x128xf32>
    %91 = arith.mulf %89, %90 : vector<1x128xf32>
    %cst_51 = arith.constant dense<0.000000e+00> : vector<1x128xf32>
    %92 = tpu.matmul %88, %1, %cst_51 {dimension_numbers = #tpu.dot_dimension_numbers<[1], [0], [0], [1], [0, 0, 1, 1], [], []>} : vector<1x128xf32>, vector<128x128xf32>, vector<1x128xf32> -> vector<1x128xf32>
    %cst_52 = arith.constant 0.001953125 : f32
    %93 = vector.broadcast %cst_52 : f32 to vector<1x128xf32>
    %94 = arith.mulf %92, %93 : vector<1x128xf32>
    %95 = arith.mulf %91, %91 : vector<1x128xf32>
    %96 = arith.subf %94, %95 : vector<1x128xf32>
    %c0_53 = arith.constant 0 : index
    %c0_54 = arith.constant 0 : index
    %97 = vector.load %arg5[%c0_53, %c0_54] : memref<1x128xf32, #tpu.memory_space<vmem>>, vector<1x128xf32>
    %cst_55 = arith.constant 9.99999974E-6 : f32
    %98 = vector.broadcast %cst_55 : f32 to vector<1x128xf32>
    %99 = arith.addf %96, %98 : vector<1x128xf32>
    %100 = math.rsqrt %99 : vector<1x128xf32>
    %101 = arith.mulf %97, %100 : vector<1x128xf32>
    %102 = vector.broadcast %91 : vector<1x128xf32> to vector<32x128xf32>
    %103 = arith.subf %83, %102 : vector<32x128xf32>
    %104 = vector.broadcast %101 : vector<1x128xf32> to vector<32x128xf32>
    %105 = arith.mulf %103, %104 : vector<32x128xf32>
    %c0_56 = arith.constant 0 : index
    %c0_57 = arith.constant 0 : index
    %106 = vector.load %arg6[%c0_56, %c0_57] : memref<1x128xf32, #tpu.memory_space<vmem>>, vector<1x128xf32>
    %107 = vector.broadcast %106 : vector<1x128xf32> to vector<32x128xf32>
    %108 = arith.addf %105, %107 : vector<32x128xf32>
    %109 = arith.addf %108, %0 : vector<32x128xf32>
    %cst_58 = arith.constant 0.000000e+00 : f32
    %110 = vector.broadcast %cst_58 : f32 to vector<32x128xf32>
    %111 = arith.maximumf %109, %110 : vector<32x128xf32>
    %c0_59 = arith.constant 0 : index
    %c0_60 = arith.constant 0 : index
    %112 = vector.load %arg8[%c0_59, %c0_60] : memref<32x128xf32, #tpu.memory_space<vmem>>, vector<32x128xf32>
    tpu.vector_store %arg8[%c0_59, %c0_60], %111 {strides = array<i32>} : memref<32x128xf32, #tpu.memory_space<vmem>>, vector<32x128xf32>,
    return
  }
}

</mosaic_0001>

<bundles_post_ra>
// kernel: tpu_custom_call.1
= control target key start
LH: loop header
LB: loop body
LE: loop exit
PB: predicated region body
PF: predicated region fallthrough
CT: control target
= control target key end

     0   :  { %13 = vsyncpa [#allocation3], 0  ;;  %s1200_s0 = inlined_call_operand.hbm [shape: f32[32,128], index: 0, kind: input, shape index: {}]   ;;  %s1201_s1 = inlined_call_operand.hbm [shape: f32[3,128,128], index: 1, kind: input, shape index: {}]   ;;  %s1202_s2 = inlined_call_operand.hbm [shape: f32[3,128,128], index: 2, kind: input, shape index: {}]   ;;  %s1203_s3 = inlined_call_operand.vmem [shape: f32[1,128], index: 3, kind: input, shape index: {}]   ;;  %s1204_s4 = inlined_call_operand.vmem [shape: f32[1,128], index: 4, kind: input, shape index: {}]   ;;  %s1205_s5 = inlined_call_operand.vmem [shape: f32[1,128], index: 5, kind: input, shape index: {}]   ;;  %s1206_s6 = inlined_call_operand.vmem [shape: f32[1,128], index: 6, kind: input, shape index: {}]   ;;  %s1207_s7 = inlined_call_operand.hbm [shape: f32[128,128], index: 7, kind: input, shape index: {}]   ;;  %s1208_s8 = inlined_call_operand.hbm [shape: f32[32,128], index: 8, kind: output, shape index: {}]  }
   0x1   :  { %14 = vsyncpa [#allocation6], 0 }
   0x2   :  { %15 = vsyncpa [#allocation9], 0 }
   0x3   :  { %16 = vsyncpa [#allocation4], 0  ;;  %s34_s29 = sshll.u32 %s1201_s1, 4  ;;  %s890_s30 = smov [#allocation5]   ;;  %s35_s29 = int_to_ptr.hbm [resolvable:$true] %s34_s29 }
   0x4   :  { %s36_s9 = sshll.u32 %s890_s30, 4  ;;  %s21_s12 = sshll.u32 %s1200_s0, 4  ;;  %s37_s9 = int_to_ptr.vmem [resolvable:$true] %s36_s9  ;;  %s22_s12 = int_to_ptr.hbm [resolvable:$true] %s21_s12 }
   0x5   :  { %s891_s13 = smov 128   ;;  %s892_s14 = smov 8  }
   0x6   :  { %42 = dma.hbm_to_vmem [thread:$0]  %s35_s29, 6144, %s37_s9, [#allocation6], %s891_s13, %s891_s13, %s892_s14  }
   0x7   :  { %s893_s15 = smov [#allocation2]   ;;  %s47_s1 = sshll.u32 %s1202_s2, 4  ;;  %s48_s1 = int_to_ptr.hbm [resolvable:$true] %s47_s1 }
   0x8   :  { %s23_s16 = sshll.u32 %s893_s15, 4  ;;  %s68_s20 = sshll.u32 %s1207_s7, 4  ;;  %s24_s16 = int_to_ptr.vmem [resolvable:$true] %s23_s16  ;;  %s69_s20 = int_to_ptr.hbm [resolvable:$true] %s68_s20 }
   0x9   :  { %29 = dma.hbm_to_vmem [thread:$0]  %s22_s12, 512, %s24_s16, [#allocation3], %s891_s13, %s891_s13, %s892_s14  }
   0xa   :  { %s894_s21 = smov [#allocation7]   ;;  %s895_s23 = smov [#allocation8]  }
   0xb   :  { %s49_s22 = sshll.u32 %s894_s21, 4  ;;  %s70_s2 = sshll.u32 %s895_s23, 4  ;;  %s50_s22 = int_to_ptr.vmem [resolvable:$true] %s49_s22  ;;  %s71_s2 = int_to_ptr.vmem [resolvable:$true] %s70_s2 }
   0xc   :  { %55 = dma.hbm_to_vmem [thread:$0]  %s48_s1, 6144, %s50_s22, [#allocation6], %s891_s13, %s891_s13, %s892_s14  }
   0xd   :  { %76 = dma.hbm_to_vmem [thread:$0]  %s69_s20, 2048, %s71_s2, [#allocation9], %s891_s13, %s891_s13, %s892_s14  }
   0xe   :  { %882 = dma.done.wait [#allocation3], 512  }
   0xf   :  { %883 = vsyncadd [#allocation3], 4294966784 }
  0x10   :  { %884 = dma.done.wait [#allocation6], 12288  }
  0x11   :  { %885 = vsyncadd [#allocation6], 4294955008 }
  0x12   :  { %886 = dma.done.wait [#allocation9], 2048  }
  0x13   :  { %887 = vsyncadd [#allocation9], 4294965248  ;;  %v307_v0 = vld [vmem:[#allocation5 + $0x178] sm:$0xff]  ;;  %v306_v1 = vld [vmem:[#allocation5 + $0x170] sm:$0xff]  ;;  %v113_v32 = vlaneseq  ;;  %s726_s9 = sshll.u32 %s1208_s8, 4  ;;  %s727_s9 = int_to_ptr.hbm [resolvable:$true] %s726_s9 }
  0x14   :  { %v219_v2 = vld [vmem:[#allocation5 + $0x78] sm:$0xff]  ;;  %308 = vmatpush.msra.mxu2 %v307_v0  ;;  %v218_v4 = vld [vmem:[#allocation5 + $0x70] sm:$0xff]  ;;  %v305_v5 = vld [vmem:[#allocation5 + $0x168] sm:$0xff] }
  0x15   :  { %220 = vmatpush.msra.mxu0 %v219_v2  ;;  %v190_v3 = vld [vmem:[#allocation5 + $0xf8] sm:$0xff]  ;;  %v189_v6 = vld [vmem:[#allocation5 + $0xf0] sm:$0xff]  ;;  %v217_v7 = vld [vmem:[#allocation5 + $0x68] sm:$0xff]  ;;  %v970_v41 = vshrl.u32 %v113_v32, 7 }
  0x16   :  { %249 = vmatpush.msra.mxu1 %v190_v3  ;;  %309 = vmatpush.msra.mxu2 %v306_v1  ;;  %v188_v8 = vld [vmem:[#allocation5 + $0xe8] sm:$0xff]  ;;  %v304_v9 = vld [vmem:[#allocation5 + $0x160] sm:$0xff]  ;;  %v303_v12 = vld [vmem:[#allocation5 + $0x158] sm:$0xff] }
  0x17   :  { %221 = vmatpush.msra.mxu0 %v218_v4  ;;  %v216_v10 = vld [vmem:[#allocation5 + $0x60] sm:$0xff]  ;;  %v215_v13 = vld [vmem:[#allocation5 + $0x58] sm:$0xff]  ;;  %v302_v15 = vld [vmem:[#allocation5 + $0x150] sm:$0xff]  ;;  %vm282_vm0 = vcmp.lt.s32.totalorder %v970_v41, 7  ;;  %v122_v51 = vand.u32 15, %v970_v41  ;;  %vm195_vm1 = vcmp.lt.s32.totalorder %v970_v41, 1 }
  0x18   :  { %250 = vmatpush.msra.mxu1 %v189_v6  ;;  %310 = vmatpush.msra.mxu2 %v305_v5  ;;  %v187_v11 = vld [vmem:[#allocation5 + $0xe0] sm:$0xff]  ;;  %v186_v14 = vld [vmem:[#allocation5 + $0xd8] sm:$0xff]  ;;  %v214_v16 = vld [vmem:[#allocation5 + $0x50] sm:$0xff]  ;;  %v115_v59 = vadd.s32 8, %v970_v41  ;;  %v116_v5 = vadd.s32 16, %v970_v41 }
  0x19   :  { %222 = vmatpush.msra.mxu0 %v217_v7  ;;  %v185_v17 = vld [vmem:[#allocation5 + $0xd0] sm:$0xff]  ;;  %v301_v18 = vld [vmem:[#allocation5 + $0x148] sm:$0xff]  ;;  %v300_v21 = vld [vmem:[#allocation5 + $0x140] sm:$0xff]  ;;  %vm984_vm2 = vcmp.gt.s32.totalorder %v122_v51, 0 }
  0x1a   :  { %251 = vmatpush.msra.mxu1 %v188_v8  ;;  %311 = vmatpush.msra.mxu2 %v304_v9  ;;  %v213_v19 = vld [vmem:[#allocation5 + $0x48] sm:$0xff]  ;;  %v212_v22 = vld [vmem:[#allocation5 + $0x40] sm:$0xff]  ;;  %v299_v24 = vld [vmem:[#allocation5 + $0x138] sm:$0xff]  ;;  %v129_v63 = vand.u32 15, %v115_v59  ;;  %v136_v7 = vand.u32 15, %v116_v5 }
  0x1b   :  { %223 = vmatpush.msra.mxu0 %v216_v10  ;;  %v184_v20 = vld [vmem:[#allocation5 + $0xc8] sm:$0xff]  ;;  %v183_v23 = vld [vmem:[#allocation5 + $0xc0] sm:$0xff]  ;;  %v211_v25 = vld [vmem:[#allocation5 + $0x38] sm:$0xff]  ;;  %v117_v10 = vadd.s32 24, %v970_v41 }
  0x1c   :  { %252 = vmatpush.msra.mxu1 %v187_v11  ;;  %312 = vmatpush.msra.mxu2 %v303_v12  ;;  %v182_v26 = vld [vmem:[#allocation5 + $0xb8] sm:$0xff]  ;;  %v298_v27 = vld [vmem:[#allocation5 + $0x130] sm:$0xff]  ;;  %v297_v29 = vld [vmem:[#allocation5 + $0x128] sm:$0xff]  ;;  %vm997_vm3 = vcmp.lt.s32.totalorder %v129_v63, 15  ;;  %vm1014_vm4 = vcmp.gt.s32.totalorder %v136_v7, 0 }
  0x1d   :  { %224 = vmatpush.msra.mxu0 %v215_v13  ;;  %v210_v28 = vld [vmem:[#allocation5 + $0x30] sm:$0xff]  ;;  %v209_v31 = vld [vmem:[#allocation5 + $0x28] sm:$0xff]  ;;  %v296_v34 = vld [vmem:[#allocation5 + $0x120] sm:$0xff]  ;;  %v143_v13 = vand.u32 15, %v117_v10 }
  0x1e   :  { %253 = vmatpush.msra.mxu1 %v186_v14  ;;  %313 = vmatpush.msra.mxu2 %v302_v15  ;;  %v181_v30 = vld [vmem:[#allocation5 + $0xb0] sm:$0xff]  ;;  %v180_v33 = vld [vmem:[#allocation5 + $0xa8] sm:$0xff]  ;;  %v208_v35 = vld [vmem:[#allocation5 + $0x20] sm:$0xff] }
  0x1f   :  { %225 = vmatpush.msra.mxu0 %v214_v16  ;;  %v295_v36 = vld [vmem:[#allocation5 + $0x118] sm:$0xff]  ;;  %v179_v37 = vld [vmem:[#allocation5 + $0xa0] sm:$0xff]  ;;  %v968_v40 = vld [vmem:[#allocation2 + $0x8] sm:$0xff]  ;;  %vm1023_vm5 = vcmp.lt.s32.totalorder %v143_v13, 15 }
  0x20   :  { %254 = vmatpush.msra.mxu1 %v185_v17  ;;  %314 = vmatpush.msra.mxu2 %v301_v18  ;;  %v207_v38 = vld [vmem:[#allocation5 + $0x18] sm:$0xff]  ;;  %v966_v39 = vld [vmem:[#allocation2] sm:$0xff]  ;;  %v294_v44 = vld [vmem:[#allocation5 + $0x110] sm:$0xff]  ;;  %v279_v48 = vrot.slane %v968_v40, 1  ;;  %v192_v1 = vrot.slane %v968_v40, 7 }
  0x21   :  { %226 = vmatpush.msra.mxu0 %v213_v19  ;;  %v178_v42 = vld [vmem:[#allocation5 + $0x98] sm:$0xff]  ;;  %v206_v45 = vld [vmem:[#allocation5 + $0x10] sm:$0xff]  ;;  %v278_v47 = vrot.slane %v966_v39, 1  ;;  %v293_v49 = vld [vmem:[#allocation5 + $0x108] sm:$0xff]  ;;  %v191_v52 = vrot.slane %v966_v39, 7 }
  0x22   :  { %255 = vmatpush.msra.mxu1 %v184_v20  ;;  %315 = vmatpush.msra.mxu2 %v300_v21  ;;  %v972_v43 = vld [vmem:[#allocation2 + $0x18] sm:$0xff]  ;;  %v177_v46 = vld [vmem:[#allocation5 + $0x90] sm:$0xff]  ;;  %v205_v50 = vld [vmem:[#allocation5 + $0x8] sm:$0xff] }
  0x23   :  { %227 = vmatpush.msra.mxu0 %v212_v22  ;;  %v194_v53 = vrot.slane %v972_v43, 7  ;;  %v176_v54 = vld [vmem:[#allocation5 + $0x88] sm:$0xff]  ;;  %v292_v55 = vld [vmem:[#allocation5 + $0x100] sm:$0xff]  ;;  %v285_v57 = vsel %vm282_vm0, %v278_v47, %v279_v48  ;;  %v990_v62 = vld [vmem:[#allocation2 + $0x10] sm:$0xff]  ;;  %v198_v4 = vsel %vm195_vm1, %v191_v52, %v192_v1  ;;  %v281_v6 = vrot.slane %v972_v43, 1 }
  0x24   :  { %256 = vmatpush.msra.mxu1 %v183_v23  ;;  %316 = vmatpush.msra.mxu2 %v299_v24  ;;  %v204_v56 = vld [vmem:[#allocation5] sm:$0xff]  ;;  %v280_v0 = vrot.slane %v990_v62, 1  ;;  %v193_v8 = vrot.slane %v990_v62, 7  ;;  %v1034_v17 = vld [vmem:[#allocation8 + $0x78] sm:$0xff]  ;;  %v1038_v18 = vld [vmem:[#allocation8 + $0x70] sm:$0xff] }
  0x25   :  { %228 = vmatpush.msra.mxu0 %v211_v25  ;;  %v175_v58 = vld [vmem:[#allocation5 + $0x80] sm:$0xff]  ;;  %v199_v61 = vsel %vm195_vm1, %v194_v53, %v191_v52  ;;  %v286_v15 = vsel %vm282_vm0, %v281_v6, %v278_v47  ;;  %363 = vmatpush.msra.mxu3 %v1034_v17  ;;  %v1042_v19 = vld [vmem:[#allocation8 + $0x68] sm:$0xff]  ;;  %v1050_v21 = vld [vmem:[#allocation8 + $0x58] sm:$0xff] }
  0x26   :  { %257 = vmatpush.msra.mxu1 %v182_v26  ;;  %317 = vmatpush.msra.mxu2 %v298_v27  ;;  %v284_v3 = vsel %vm282_vm0, %v279_v48, %v280_v0  ;;  %v283_v9 = vsel %vm282_vm0, %v280_v0, %v281_v6  ;;  %v197_v12 = vsel %vm195_vm1, %v192_v1, %v193_v8  ;;  %v1046_v20 = vld [vmem:[#allocation8 + $0x60] sm:$0xff]  ;;  %v1054_v22 = vld [vmem:[#allocation8 + $0x50] sm:$0xff]  ;;  %v1058_v23 = vld [vmem:[#allocation8 + $0x48] sm:$0xff] }
  0x27   :  { %229 = vmatpush.msra.mxu0 %v210_v28  ;;  %v196_v16 = vsel %vm195_vm1, %v193_v8, %v194_v53  ;;  %364 = vmatpush.msra.mxu3 %v1038_v18  ;;  %v1062_v24 = vld [vmem:[#allocation8 + $0x40] sm:$0xff]  ;;  %v1066_v25 = vld [vmem:[#allocation8 + $0x38] sm:$0xff]  ;;  %v1070_v28 = vld [vmem:[#allocation8 + $0x30] sm:$0xff] }
  0x28   :  { %258 = vmatpush.msra.mxu1 %v181_v30  ;;  %318 = vmatpush.msra.mxu2 %v297_v29  ;;  %v1074_v29 = vld [vmem:[#allocation8 + $0x28] sm:$0xff]  ;;  %v1078_v30 = vld [vmem:[#allocation8 + $0x20] sm:$0xff] }
  0x29   :  { %230 = vmatpush.msra.mxu0 %v209_v31  ;;  %365 = vmatpush.msra.mxu3 %v1042_v19  ;;  %v1080_v31 = vld [vmem:[#allocation8 + $0x18] sm:$0xff] }
  0x2a   :  { %259 = vmatpush.msra.mxu1 %v180_v33  ;;  %319 = vmatpush.msra.mxu2 %v296_v34  ;;  %v1084_v33 = vld [vmem:[#allocation8 + $0x10] sm:$0xff] }
  0x2b   :  { %231 = vmatpush.msra.mxu0 %v208_v35  ;;  %366 = vmatpush.msra.mxu3 %v1046_v20 }
  0x2c   :  { %260 = vmatpush.msra.mxu1 %v179_v37  ;;  %320 = vmatpush.msra.mxu2 %v295_v36  ;;  %v1088_v36 = vld [vmem:[#allocation8 + $0x8] sm:$0xff]  ;;  %v1092_v37 = vld [vmem:[#allocation8] sm:$0xff] }
  0x2d   :  { %232 = vmatpush.msra.mxu0 %v207_v38  ;;  %367 = vmatpush.msra.mxu3 %v1050_v21 }
  0x2e   :  { %261 = vmatpush.msra.mxu1 %v178_v42  ;;  %321 = vmatpush.msra.mxu2 %v294_v44 }
  0x2f   :  { %233 = vmatpush.msra.mxu0 %v206_v45  ;;  %368 = vmatpush.msra.mxu3 %v1054_v22 }
  0x30   :  { %262 = vmatpush.msra.mxu1 %v177_v46  ;;  %322 = vmatpush.msra.mxu2 %v293_v49 }
  0x31   :  { %234 = vmatpush.msra.mxu0 %v205_v50  ;;  %369 = vmatpush.msra.mxu3 %v1058_v23 }
  0x32   :  { %263 = vmatpush.msra.mxu1 %v176_v54  ;;  %323 = vmatpush.msra.mxu2 %v292_v55 }
  0x33   :  { %235 = vmatpush.msra.mxu0 %v204_v56  ;;  %324 = vmatmul.f32.vlgmr.msra.gmra.mxu2 %v285_v57 }
  0x34   :  { %264 = vmatpush.msra.mxu1 %v175_v58  ;;  %741 = vmatmul.msk.f32.vlgmr.msra.gmra.mxu0 %vm984_vm2, %v199_v61 }
  0x35   :  { %265 = vmatmul.f32.vlgmr.msra.gmra.mxu1 %v966_v39  ;;  %384 = vmatpush.msrb.mxu0 %v1034_v17 }
  0x36   :  { %370 = vmatpush.msra.mxu3 %v1062_v24 }
  0x37   :  { %385 = vmatpush.msrb.mxu0 %v1038_v18 }
  0x38   :  { %371 = vmatpush.msra.mxu3 %v1066_v25 }
  0x39   :  { %386 = vmatpush.msrb.mxu0 %v1042_v19 }
  0x3a   :  { %372 = vmatpush.msra.mxu3 %v1070_v28 }
  0x3b   :  { %743 = vmatmul.msk.f32.gmra.mxu2 %vm997_vm3, %v284_v3  ;;  %387 = vmatpush.msrb.mxu0 %v1046_v20 }
  0x3c   :  { %239 = vmatmul.f32.gmra.mxu0 %v198_v4  ;;  %373 = vmatpush.msra.mxu3 %v1074_v29 }
  0x3d   :  { %268 = vmatmul.f32.gmra.mxu1 %v968_v40  ;;  %388 = vmatpush.msrb.mxu0 %v1050_v21 }
  0x3e   :  { %374 = vmatpush.msra.mxu3 %v1078_v30 }
  0x3f   :  { %389 = vmatpush.msrb.mxu0 %v1054_v22 }
  0x40   :  { %375 = vmatpush.msra.mxu3 %v1080_v31 }
  0x41   :  { %390 = vmatpush.msrb.mxu0 %v1058_v23 }
  0x42   :  { %376 = vmatpush.msra.mxu3 %v1084_v33 }
  0x43   :  { %330 = vmatmul.f32.gmra.mxu2 %v283_v9  ;;  %391 = vmatpush.msrb.mxu0 %v1062_v24 }
  0x44   :  { %742 = vmatmul.msk.f32.gmra.mxu0 %vm1014_vm4, %v197_v12  ;;  %377 = vmatpush.msra.mxu3 %v1088_v36 }
  0x45   :  { %271 = vmatmul.f32.gmra.mxu1 %v990_v62  ;;  %392 = vmatpush.msrb.mxu0 %v1066_v25 }
  0x46   :  { %378 = vmatpush.msra.mxu3 %v1092_v37 }
  0x47   :  { %393 = vmatpush.msrb.mxu0 %v1070_v28 }
  0x49   :  { %394 = vmatpush.msrb.mxu0 %v1074_v29 }
  0x4b   :  { %744 = vmatmul.msk.f32.gmra.mxu2 %vm1023_vm5, %v286_v15  ;;  %395 = vmatpush.msrb.mxu0 %v1078_v30 }
  0x4c   :  { %245 = vmatmul.f32.gmra.mxu0 %v196_v16 }
  0x4d   :  { %274 = vmatmul.f32.gmra.mxu1 %v972_v43  ;;  %396 = vmatpush.msrb.mxu0 %v1080_v31 }
  0x4f   :  { %397 = vmatpush.msrb.mxu0 %v1084_v33 }
  0x51   :  { %398 = vmatpush.msrb.mxu0 %v1088_v36 }
  0x53   :  { %399 = vmatpush.msrb.mxu0 %v1092_v37 }
  0x55   :  { %631 = vmatpush.msra.mxu0 %v1034_v17 }
  0x57   :  { %632 = vmatpush.msra.mxu0 %v1038_v18 }
  0x59   :  { %633 = vmatpush.msra.mxu0 %v1042_v19 }
  0x5b   :  { %634 = vmatpush.msra.mxu0 %v1046_v20 }
  0x5d   :  { %635 = vmatpush.msra.mxu0 %v1050_v21 }
  0x5f   :  { %636 = vmatpush.msra.mxu0 %v1054_v22 }
  0x61   :  { %637 = vmatpush.msra.mxu0 %v1058_v23 }
  0x63   :  { %638 = vmatpush.msra.mxu0 %v1062_v24 }
  0x65   :  { %639 = vmatpush.msra.mxu0 %v1066_v25 }
  0x67   :  { %640 = vmatpush.msra.mxu0 %v1070_v28 }
  0x69   :  { %641 = vmatpush.msra.mxu0 %v1074_v29 }
  0x6b   :  { %642 = vmatpush.msra.mxu0 %v1078_v30 }
  0x6d   :  { %643 = vmatpush.msra.mxu0 %v1080_v31 }
  0x6f   :  { %644 = vmatpush.msra.mxu0 %v1084_v33 }
  0x71   :  { %645 = vmatpush.msra.mxu0 %v1088_v36 }
  0x73   :  { %646 = vmatpush.msra.mxu0 %v1092_v37 }
  0xb1   :  { %v237_v26 = vpop.f32.mrf.mxu0 }
  0xb2   :  { %v266_v27 = vpop.f32.mrf.mxu1 }
  0xb3   :  { %v267_v46 = vadd.f32 %v266_v27, %v237_v26 }
  0xb6   :  { %v325_v32 = vpop.f32.mrf.mxu2 }
  0xb7   :  { %v1105_v50 = vadd.f32 %v325_v32, %v267_v46  ;;  %v574_v46 = vld [vmem:[#allocation7 + $0x170] sm:$0xff] }
  0xb9   :  { %v240_v34 = vpop.f32.mrf.mxu0  ;;  %v350_v56 = vmul.f32 %v1105_v50, %v1105_v50 }
  0xba   :  { %v269_v35 = vpop.f32.mrf.mxu1 }
  0xbb   :  { %v270_v45 = vadd.f32 %v269_v35, %v240_v34  ;;  %v460_v34 = vld [vmem:[#allocation7 + $0xf8] sm:$0xff]  ;;  %v459_v35 = vld [vmem:[#allocation7 + $0xf0] sm:$0xff] }
  0xbc   :  { %518 = vmatpush.msrb.mxu2 %v460_v34  ;;  %v477_v34 = vld [vmem:[#allocation7 + $0x20] sm:$0xff] }
  0xbe   :  { %v328_v38 = vpop.f32.mrf.mxu2  ;;  %519 = vmatpush.msrb.mxu2 %v459_v35  ;;  %v564_v35 = vld [vmem:[#allocation7 + $0x120] sm:$0xff] }
  0xbf   :  { %v1102_v49 = vadd.f32 %v328_v38, %v270_v45  ;;  %v488_v38 = vld [vmem:[#allocation7 + $0x78] sm:$0xff]  ;;  %v487_v45 = vld [vmem:[#allocation7 + $0x70] sm:$0xff] }
  0xc0   :  { %489 = vmatpush.msrb.mxu1 %v488_v38  ;;  %v447_v38 = vld [vmem:[#allocation7 + $0x90] sm:$0xff] }
  0xc1   :  { %v243_v42 = vpop.f32.mrf.mxu0  ;;  %v351_v54 = vmul.f32 %v1102_v49, %v1102_v49  ;;  %v341_v57 = vadd.f32 %v1102_v49, %v1105_v50 }
  0xc2   :  { %v272_v44 = vpop.f32.mrf.mxu1  ;;  %490 = vmatpush.msrb.mxu1 %v487_v45 }
  0xc3   :  { %v273_v47 = vadd.f32 %v272_v44, %v243_v42  ;;  %v354_v61 = vadd.f32 %v351_v54, %v350_v56  ;;  %v575_v42 = vld [vmem:[#allocation7 + $0x178] sm:$0xff]  ;;  %v458_v44 = vld [vmem:[#allocation7 + $0xe8] sm:$0xff]  ;;  %v485_v54 = vld [vmem:[#allocation7 + $0x60] sm:$0xff] }
  0xc4   :  { %576 = vmatpush.msrb.mxu3 %v575_v42  ;;  %520 = vmatpush.msrb.mxu2 %v458_v44  ;;  %v455_v56 = vld [vmem:[#allocation7 + $0xd0] sm:$0xff]  ;;  %v476_v42 = vld [vmem:[#allocation7 + $0x18] sm:$0xff] }
  0xc5   :  { %v563_v44 = vld [vmem:[#allocation7 + $0x118] sm:$0xff] }
  0xc6   :  { %v331_v48 = vpop.f32.mrf.mxu2  ;;  %577 = vmatpush.msrb.mxu3 %v574_v46 }
  0xc7   :  { %v1107_v51 = vadd.f32 %v331_v48, %v273_v47  ;;  %v457_v47 = vld [vmem:[#allocation7 + $0xe0] sm:$0xff]  ;;  %v486_v48 = vld [vmem:[#allocation7 + $0x68] sm:$0xff] }
  0xc8   :  { %521 = vmatpush.msrb.mxu2 %v457_v47  ;;  %491 = vmatpush.msrb.mxu1 %v486_v48  ;;  %v446_v47 = vld [vmem:[#allocation7 + $0x88] sm:$0xff]  ;;  %v475_v48 = vld [vmem:[#allocation7 + $0x10] sm:$0xff] }
  0xc9   :  { %v246_v52 = vpop.f32.mrf.mxu0  ;;  %v352_v58 = vmul.f32 %v1107_v51, %v1107_v51  ;;  %v342_v63 = vadd.f32 %v341_v57, %v1107_v51  ;;  %v484_v57 = vld [vmem:[#allocation7 + $0x58] sm:$0xff] }
  0xca   :  { %v275_v53 = vpop.f32.mrf.mxu1  ;;  %492 = vmatpush.msrb.mxu1 %v485_v54  ;;  %v445_v54 = vld [vmem:[#allocation7 + $0x80] sm:$0xff] }
  0xcb   :  { %v276_v55 = vadd.f32 %v275_v53, %v246_v52  ;;  %v355_v1 = vadd.f32 %v354_v61, %v352_v58  ;;  %v573_v52 = vld [vmem:[#allocation7 + $0x168] sm:$0xff]  ;;  %v456_v53 = vld [vmem:[#allocation7 + $0xd8] sm:$0xff]  ;;  %v483_v61 = vld [vmem:[#allocation7 + $0x50] sm:$0xff] }
  0xcc   :  { %578 = vmatpush.msrb.mxu3 %v573_v52  ;;  %522 = vmatpush.msrb.mxu2 %v456_v53  ;;  %v571_v58 = vld [vmem:[#allocation7 + $0x158] sm:$0xff]  ;;  %v562_v52 = vld [vmem:[#allocation7 + $0x110] sm:$0xff] }
  0xcd   :  { %493 = vmatpush.msrb.mxu1 %v484_v57 }
  0xce   :  { %v334_v59 = vpop.f32.mrf.mxu2  ;;  %523 = vmatpush.msrb.mxu2 %v455_v56 }
  0xcf   :  { %v1121_v0 = vadd.f32 %v334_v59, %v276_v55  ;;  %v572_v55 = vld [vmem:[#allocation7 + $0x160] sm:$0xff]  ;;  %v454_v59 = vld [vmem:[#allocation7 + $0xc8] sm:$0xff]  ;;  %494 = vmatpush.msrb.mxu1 %v483_v61 }
  0xd0   :  { %579 = vmatpush.msrb.mxu3 %v572_v55  ;;  %524 = vmatpush.msrb.mxu2 %v454_v59  ;;  %v474_v55 = vld [vmem:[#allocation7 + $0x8] sm:$0xff]  ;;  %v473_v61 = vld [vmem:[#allocation7] sm:$0xff] }
  0xd1   :  { %v343_v3 = vadd.f32 %v342_v63, %v1121_v0  ;;  %v353_v4 = vmul.f32 %v1121_v0, %v1121_v0  ;;  %v570_v63 = vld [vmem:[#allocation7 + $0x150] sm:$0xff]  ;;  %v561_v59 = vld [vmem:[#allocation7 + $0x108] sm:$0xff] }
  0xd2   :  { %580 = vmatpush.msrb.mxu3 %v571_v58 }
  0xd3   :  { %v344_v5 = vrot.slane %v343_v3, 4  ;;  %v356_v6 = vadd.f32 %v355_v1, %v353_v4  ;;  %v453_v1 = vld [vmem:[#allocation7 + $0xc0] sm:$0xff]  ;;  %v569_v4 = vld [vmem:[#allocation7 + $0x148] sm:$0xff] }
  0xd4   :  { %581 = vmatpush.msrb.mxu3 %v570_v63  ;;  %525 = vmatpush.msrb.mxu2 %v453_v1  ;;  %v560_v63 = vld [vmem:[#allocation7 + $0x100] sm:$0xff] }
  0xd5   :  { %v357_v7 = vrot.slane %v356_v6, 4  ;;  %v345_v8 = vadd.f32 %v344_v5, %v343_v3  ;;  %v482_v3 = vld [vmem:[#allocation7 + $0x48] sm:$0xff]  ;;  %v452_v5 = vld [vmem:[#allocation7 + $0xb8] sm:$0xff] }
  0xd6   :  { %495 = vmatpush.msrb.mxu1 %v482_v3  ;;  %582 = vmatpush.msrb.mxu3 %v569_v4 }
  0xd7   :  { %v346_v9 = vrot.slane %v345_v8, 2  ;;  %v358_v10 = vadd.f32 %v357_v7, %v356_v6  ;;  %526 = vmatpush.msrb.mxu2 %v452_v5  ;;  %v481_v6 = vld [vmem:[#allocation7 + $0x40] sm:$0xff] }
  0xd8   :  { %v568_v7 = vld [vmem:[#allocation7 + $0x140] sm:$0xff]  ;;  %496 = vmatpush.msrb.mxu1 %v481_v6 }
  0xd9   :  { %v347_v12 = vadd.f32 %v346_v9, %v345_v8  ;;  %v359_v13 = vrot.slane %v358_v10, 2  ;;  %583 = vmatpush.msrb.mxu3 %v568_v7  ;;  %v451_v8 = vld [vmem:[#allocation7 + $0xb0] sm:$0xff]  ;;  %v480_v9 = vld [vmem:[#allocation7 + $0x38] sm:$0xff] }
  0xda   :  { %527 = vmatpush.msrb.mxu2 %v451_v8  ;;  %497 = vmatpush.msrb.mxu1 %v480_v9 }
  0xdb   :  { %v348_v15 = vrot.slane %v347_v12, 1  ;;  %v360_v16 = vadd.f32 %v359_v13, %v358_v10  ;;  %v567_v10 = vld [vmem:[#allocation7 + $0x138] sm:$0xff]  ;;  %v479_v13 = vld [vmem:[#allocation7 + $0x30] sm:$0xff] }
  0xdc   :  { %584 = vmatpush.msrb.mxu3 %v567_v10  ;;  %498 = vmatpush.msrb.mxu1 %v479_v13 }
  0xdd   :  { %v349_v26 = vadd.f32 %v348_v15, %v347_v12  ;;  %v361_v27 = vrot.slane %v360_v16, 1  ;;  %v450_v12 = vld [vmem:[#allocation7 + $0xa8] sm:$0xff]  ;;  %v566_v15 = vld [vmem:[#allocation7 + $0x130] sm:$0xff] }
  0xde   :  { %528 = vmatpush.msrb.mxu2 %v450_v12  ;;  %585 = vmatpush.msrb.mxu3 %v566_v15 }
  0xdf   :  { %379 = vmatmul.f32.vlgmr.msra.gmra.mxu3 %v349_v26  ;;  %v362_v32 = vadd.f32 %v361_v27, %v360_v16  ;;  %v449_v16 = vld [vmem:[#allocation7 + $0xa0] sm:$0xff]  ;;  %v478_v26 = vld [vmem:[#allocation7 + $0x28] sm:$0xff] }
  0xe0   :  { %529 = vmatpush.msrb.mxu2 %v449_v16  ;;  %v565_v27 = vld [vmem:[#allocation7 + $0x128] sm:$0xff]  ;;  %499 = vmatpush.msrb.mxu1 %v478_v26 }
  0xe1   :  { %400 = vmatmul.f32.vlgmr.msrb.gmra.mxu0 %v362_v32  ;;  %586 = vmatpush.msrb.mxu3 %v565_v27  ;;  %v448_v32 = vld [vmem:[#allocation7 + $0x98] sm:$0xff] }
  0xe2   :  { %530 = vmatpush.msrb.mxu2 %v448_v32  ;;  %500 = vmatpush.msrb.mxu1 %v477_v34 }
  0xe3   :  { %587 = vmatpush.msrb.mxu3 %v564_v35 }
  0xe4   :  { %531 = vmatpush.msrb.mxu2 %v447_v38  ;;  %501 = vmatpush.msrb.mxu1 %v476_v42 }
  0xe5   :  { %588 = vmatpush.msrb.mxu3 %v563_v44 }
  0xe6   :  { %532 = vmatpush.msrb.mxu2 %v446_v47  ;;  %502 = vmatpush.msrb.mxu1 %v475_v48 }
  0xe7   :  { %589 = vmatpush.msrb.mxu3 %v562_v52 }
  0xe8   :  { %533 = vmatpush.msrb.mxu2 %v445_v54  ;;  %503 = vmatpush.msrb.mxu1 %v474_v55 }
  0xe9   :  { %590 = vmatpush.msrb.mxu3 %v561_v59 }
  0xea   :  { %504 = vmatpush.msrb.mxu1 %v473_v61 }
  0xeb   :  { %591 = vmatpush.msrb.mxu3 %v560_v63 }
  0xec   :  { %652 = vmatpush.msra.mxu1 %v1034_v17  ;;  %v407_v17 = vld [vmem:[%s1203_s3] sm:$0x1] }
  0xee   :  { %653 = vmatpush.msra.mxu1 %v1038_v18 }
  0xf0   :  { %654 = vmatpush.msra.mxu1 %v1042_v19 }
  0xf2   :  { %655 = vmatpush.msra.mxu1 %v1046_v20 }
  0xf4   :  { %656 = vmatpush.msra.mxu1 %v1050_v21 }
  0xf6   :  { %657 = vmatpush.msra.mxu1 %v1054_v22 }
  0xf8   :  { %658 = vmatpush.msra.mxu1 %v1058_v23 }
  0xfa   :  { %659 = vmatpush.msra.mxu1 %v1062_v24 }
  0xfc   :  { %660 = vmatpush.msra.mxu1 %v1066_v25  ;;  %v756_v25 = vld [vmem:[%s1204_s4] ss:$0 sm:$0xff] }
  0xfe   :  { %661 = vmatpush.msra.mxu1 %v1070_v28 }
 0x100   :  { %662 = vmatpush.msra.mxu1 %v1074_v29 }
 0x102   :  { %663 = vmatpush.msra.mxu1 %v1078_v30 }
 0x104   :  { %664 = vmatpush.msra.mxu1 %v1080_v31 }
 0x106   :  { %665 = vmatpush.msra.mxu1 %v1084_v33 }
 0x108   :  { %666 = vmatpush.msra.mxu1 %v1088_v36 }
 0x10a   :  { %667 = vmatpush.msra.mxu1 %v1092_v37 }
 0x15e   :  { %v401_v45 = vpop.f32.mrf.mxu0 }
 0x15f   :  { %v404_v56 = vmul.f32 0.001953125, %v401_v45 }
 0x162   :  { %v380_v46 = vpop.f32.mrf.mxu3 }
 0x163   :  { %v383_v53 = vmul.f32 0.001953125, %v380_v46 }
 0x165   :  { %v405_v57 = vmul.f32 %v383_v53, %v383_v53  ;;  %v420_v19 = vperm.slane %v383_v53, 0 }
 0x167   :  { %v406_v58 = vsub.f32 %v404_v56, %v405_v57  ;;  %v422_v22 = vsub.f32 %v1102_v49, %v420_v19  ;;  %v423_v23 = vsub.f32 %v1107_v51, %v420_v19  ;;  %v424_v24 = vsub.f32 %v1121_v0, %v420_v19 }
 0x168   :  { %v421_v9 = vsub.f32 %v1105_v50, %v420_v19 }
 0x169   :  { %v408_v1 = vadd.f32 1e-05, %v406_v58 }
 0x16b   :  { %758 = vrsqrt.f32 %v408_v1  ;;  %vm415_vm7 = vweird.f32 %v408_v1 }
 0x171   :  { %v759_v3 = vpop.eup %758 }
 0x172   :  { %v410_v4 = vmul.f32 %v759_v3, %v408_v1  ;;  %vm416_vm6 = vweird.f32 %v759_v3 }
 0x173   :  { %vm417_vm8 = vmor %vm415_vm7, %vm416_vm6 }
 0x174   :  { %v411_v5 = vmul.f32 %v759_v3, %v410_v4 }
 0x176   :  { %v412_v6 = vmul.f32 0.5, %v411_v5 }
 0x178   :  { %v413_v7 = vsub.f32 1.5, %v412_v6 }
 0x17a   :  { %v414_v18 = vmul.f32 %v759_v3, %v413_v7 }
 0x17c   :  { %v418_v20 = vsel %vm417_vm8, %v759_v3, %v414_v18 }
 0x17d   :  { %v419_v21 = vmul.f32 %v418_v20, %v407_v17 }
 0x17f   :  { %v426_v8 = vperm.slane %v419_v21, 0 }
 0x181   :  { %v429_v10 = vmul.f32 %v426_v8, %v422_v22  ;;  %v430_v28 = vmul.f32 %v426_v8, %v423_v23  ;;  %v431_v12 = vmul.f32 %v426_v8, %v424_v24  ;;  %v428_v13 = vmul.f32 %v426_v8, %v421_v9 }
 0x183   :  { %v436_v29 = vadd.f32 %v756_v25, %v428_v13  ;;  %v439_v49 = vadd.f32 %v756_v25, %v431_v12  ;;  %v437_v51 = vadd.f32 %v756_v25, %v429_v10  ;;  %v438_v16 = vadd.f32 %v756_v25, %v430_v28 }
 0x185   :  { %v440_v0 = vmax.f32 %v436_v29, 0.0  ;;  %v443_v15 = vmax.f32 %v439_v49, 0.0  ;;  %v441_v50 = vmax.f32 %v437_v51, 0.0  ;;  %v442_v33 = vmax.f32 %v438_v16, 0.0 }
 0x187   :  { %534 = vmatmul.f32.vlgmr.msrb.gmra.mxu2 %v440_v0  ;;  %v461_v26 = vrot.slane %v440_v0, 7  ;;  %v464_v30 = vrot.slane %v443_v15, 7  ;;  %v547_v27 = vrot.slane %v440_v0, 1  ;;  %v548_v32 = vrot.slane %v441_v50, 1 }
 0x188   :  { %v462_v35 = vrot.slane %v441_v50, 7  ;;  %v549_v36 = vrot.slane %v442_v33, 1  ;;  %v463_v42 = vrot.slane %v442_v33, 7  ;;  %v550_v44 = vrot.slane %v443_v15, 1 }
 0x189   :  { %v468_v31 = vsel %vm195_vm1, %v464_v30, %v461_v26  ;;  %v553_v34 = vsel %vm282_vm0, %v547_v27, %v548_v32 }
 0x18a   :  { %745 = vmatmul.msk.f32.vlgmr.msrb.gmra.mxu1 %vm984_vm2, %v468_v31  ;;  %592 = vmatmul.f32.vlgmr.msrb.gmra.mxu3 %v553_v34  ;;  %v467_v38 = vsel %vm195_vm1, %v461_v26, %v462_v35  ;;  %v552_v37 = vsel %vm282_vm0, %v548_v32, %v549_v36  ;;  %v466_v60 = vsel %vm195_vm1, %v462_v35, %v463_v42 }
 0x18b   :  { %v551_v45 = vsel %vm282_vm0, %v549_v36, %v550_v44  ;;  %v465_v46 = vsel %vm195_vm1, %v463_v42, %v464_v30  ;;  %v554_v2 = vsel %vm282_vm0, %v550_v44, %v547_v27  ;;  %v675_v44 = vld [vmem:[%s1205_s5] sm:$0x1]  ;;  %s896_s5 = smov [#allocation10]  }
 0x18f   :  { %537 = vmatmul.f32.gmra.mxu2 %v441_v50 }
 0x192   :  { %508 = vmatmul.f32.gmra.mxu1 %v467_v38  ;;  %747 = vmatmul.msk.f32.gmra.mxu3 %vm997_vm3, %v552_v37 }
 0x197   :  { %540 = vmatmul.f32.gmra.mxu2 %v442_v33 }
 0x19a   :  { %746 = vmatmul.msk.f32.gmra.mxu1 %vm1014_vm4, %v466_v60  ;;  %598 = vmatmul.f32.gmra.mxu3 %v551_v45 }
 0x19f   :  { %543 = vmatmul.f32.gmra.mxu2 %v443_v15 }
 0x1a2   :  { %514 = vmatmul.f32.gmra.mxu1 %v465_v46  ;;  %748 = vmatmul.msk.f32.gmra.mxu3 %vm1023_vm5, %v554_v2 }
 0x207   :  { %v506_v47 = vpop.f32.mrf.mxu1 }
 0x20a   :  { %v535_v48 = vpop.f32.mrf.mxu2 }
 0x20b   :  { %v536_v58 = vadd.f32 %v535_v48, %v506_v47 }
 0x20d   :  { %v593_v52 = vpop.f32.mrf.mxu3 }
 0x20e   :  { %v605_v1 = vadd.f32 %v593_v52, %v536_v58 }
 0x20f   :  { %v509_v53 = vpop.f32.mrf.mxu1 }
 0x210   :  { %v618_v6 = vmul.f32 %v605_v1, %v605_v1 }
 0x212   :  { %v538_v54 = vpop.f32.mrf.mxu2 }
 0x213   :  { %v539_v56 = vadd.f32 %v538_v54, %v509_v53  ;;  %v757_v54 = vld [vmem:[%s1206_s6] ss:$0 sm:$0xff]  ;;  %s724_s6 = sshll.u32 %s896_s5, 4  ;;  %s725_s6 = int_to_ptr.vmem [resolvable:$true] %s724_s6 }
 0x215   :  { %v596_v55 = vpop.f32.mrf.mxu3 }
 0x216   :  { %v606_v63 = vadd.f32 %v596_v55, %v539_v56 }
 0x217   :  { %v512_v11 = vpop.f32.mrf.mxu1 }
 0x218   :  { %v619_v3 = vmul.f32 %v606_v63, %v606_v63  ;;  %v609_v7 = vadd.f32 %v606_v63, %v605_v1 }
 0x21a   :  { %v541_v57 = vpop.f32.mrf.mxu2  ;;  %v622_v19 = vadd.f32 %v619_v3, %v618_v6 }
 0x21b   :  { %v542_v59 = vadd.f32 %v541_v57, %v512_v11 }
 0x21d   :  { %v599_v61 = vpop.f32.mrf.mxu3 }
 0x21e   :  { %v607_v41 = vadd.f32 %v599_v61, %v542_v59 }
 0x21f   :  { %v515_v4 = vpop.f32.mrf.mxu1 }
 0x220   :  { %v620_v17 = vmul.f32 %v607_v41, %v607_v41  ;;  %v610_v20 = vadd.f32 %v609_v7, %v607_v41 }
 0x222   :  { %v544_v5 = vpop.f32.mrf.mxu2  ;;  %v623_v22 = vadd.f32 %v622_v19, %v620_v17 }
 0x223   :  { %v545_v14 = vadd.f32 %v544_v5, %v515_v4 }
 0x225   :  { %v602_v18 = vpop.f32.mrf.mxu3 }
 0x226   :  { %v608_v21 = vadd.f32 %v602_v18, %v545_v14 }
 0x228   :  { %v611_v23 = vadd.f32 %v610_v20, %v608_v21  ;;  %v621_v24 = vmul.f32 %v608_v21, %v608_v21 }
 0x22a   :  { %v612_v8 = vrot.slane %v611_v23, 4  ;;  %v624_v9 = vadd.f32 %v623_v22, %v621_v24 }
 0x22c   :  { %v613_v25 = vadd.f32 %v612_v8, %v611_v23  ;;  %v625_v10 = vrot.slane %v624_v9, 4 }
 0x22e   :  { %v614_v28 = vrot.slane %v613_v25, 2  ;;  %v626_v12 = vadd.f32 %v625_v10, %v624_v9 }
 0x230   :  { %v615_v13 = vadd.f32 %v614_v28, %v613_v25  ;;  %v627_v29 = vrot.slane %v626_v12, 2 }
 0x232   :  { %v616_v49 = vrot.slane %v615_v13, 1  ;;  %v628_v51 = vadd.f32 %v627_v29, %v626_v12 }
 0x234   :  { %v617_v0 = vadd.f32 %v616_v49, %v615_v13  ;;  %v629_v15 = vrot.slane %v628_v51, 1 }
 0x236   :  { %647 = vmatmul.f32.vlgmr.msra.gmra.mxu0 %v617_v0  ;;  %v630_v50 = vadd.f32 %v629_v15, %v628_v51 }
 0x238   :  { %668 = vmatmul.f32.vlgmr.msra.gmra.mxu1 %v630_v50 }
 0x2b3   :  { %v648_v16 = vpop.f32.mrf.mxu0 }
 0x2b4   :  { %v651_v26 = vmul.f32 0.001953125, %v648_v16 }
 0x2b5   :  { %v669_v30 = vpop.f32.mrf.mxu1 }
 0x2b6   :  { %v673_v27 = vmul.f32 %v651_v26, %v651_v26  ;;  %v672_v32 = vmul.f32 0.001953125, %v669_v30  ;;  %v688_v42 = vperm.slane %v651_v26, 0 }
 0x2b8   :  { %v674_v31 = vsub.f32 %v672_v32, %v673_v27  ;;  %v689_v2 = vsub.f32 %v605_v1, %v688_v42  ;;  %v690_v47 = vsub.f32 %v606_v63, %v688_v42  ;;  %v691_v48 = vsub.f32 %v607_v41, %v688_v42 }
 0x2b9   :  { %v692_v52 = vsub.f32 %v608_v21, %v688_v42 }
 0x2ba   :  { %v676_v34 = vadd.f32 1e-05, %v674_v31 }
 0x2bc   :  { %760 = vrsqrt.f32 %v676_v34  ;;  %vm683_vm10 = vweird.f32 %v676_v34 }
 0x2c2   :  { %v761_v33 = vpop.eup %760 }
 0x2c3   :  { %v678_v35 = vmul.f32 %v761_v33, %v676_v34  ;;  %vm684_vm9 = vweird.f32 %v761_v33 }
 0x2c4   :  { %vm685_vm11 = vmor %vm683_vm10, %vm684_vm9 }
 0x2c5   :  { %v679_v36 = vmul.f32 %v761_v33, %v678_v35 }
 0x2c7   :  { %v680_v38 = vmul.f32 0.5, %v679_v36 }
 0x2c9   :  { %v681_v37 = vsub.f32 1.5, %v680_v38 }
 0x2cb   :  { %v682_v60 = vmul.f32 %v761_v33, %v681_v37 }
 0x2cd   :  { %v686_v45 = vsel %vm685_vm11, %v761_v33, %v682_v60 }
 0x2ce   :  { %v687_v46 = vmul.f32 %v686_v45, %v675_v44 }
 0x2d0   :  { %v694_v53 = vperm.slane %v687_v46, 0 }
 0x2d2   :  { %v696_v55 = vmul.f32 %v694_v53, %v689_v2  ;;  %v697_v11 = vmul.f32 %v694_v53, %v690_v47  ;;  %v698_v56 = vmul.f32 %v694_v53, %v691_v48  ;;  %v699_v57 = vmul.f32 %v694_v53, %v692_v52 }
 0x2d4   :  { %v704_v58 = vadd.f32 %v757_v54, %v696_v55  ;;  %v705_v59 = vadd.f32 %v757_v54, %v697_v11  ;;  %v706_v61 = vadd.f32 %v757_v54, %v698_v56  ;;  %v707_v3 = vadd.f32 %v757_v54, %v699_v57 }
 0x2d6   :  { %v708_v4 = vadd.f32 %v704_v58, %v966_v39  ;;  %v709_v1 = vadd.f32 %v705_v59, %v968_v40  ;;  %v710_v63 = vadd.f32 %v706_v61, %v990_v62  ;;  %v711_v41 = vadd.f32 %v707_v3, %v972_v43 }
 0x2d8   :  { %v712_v5 = vmax.f32 %v708_v4, 0.0  ;;  %v713_v14 = vmax.f32 %v709_v1, 0.0  ;;  %v714_v6 = vmax.f32 %v710_v63, 0.0  ;;  %v715_v7 = vmax.f32 %v711_v41, 0.0 }
 0x2da   :  { %716 = vst [vmem:[#allocation10] sm:$0xff] %v712_v5 }
 0x2db   :  { %717 = vst [vmem:[#allocation10 + $0x8] sm:$0xff] %v713_v14 }
 0x2dc   :  { %718 = vst [vmem:[#allocation10 + $0x10] sm:$0xff] %v714_v6 }
 0x2dd   :  { %719 = vst [vmem:[#allocation10 + $0x18] sm:$0xff] %v715_v7 }
 0x2de   :  { %732 = dma.vmem_to_hbm [thread:$0]  %s725_s6, 512, %s727_s9, [#allocation4], %s891_s13, %s891_s13, %s892_s14  }
 0x2df   :  { %888 = dma.done.wait [#allocation4], 512  }
 0x2e0   :  { %889 = vsyncadd [#allocation4], 4294966784 }
 0x2e1   :  { %737 = vsyncpa [#allocation3], 1 }
 0x2e2   :  { %738 = vsyncpa [#allocation6], 1 }
 0x2e3   :  { %739 = vsyncpa [#allocation9], 1 }
 0x2e4   :  { %740 = vsyncpa [#allocation4], 1 }

</bundles_post_ra>
